<compile_context>
chip_gen: v7x
topology: tpu7x:2x2x1
jax: 0.10.0
libtpu: 0.0.40
codegen_flags: <defaults>
</compile_context>

<pallas_src>
import functools

import jax
import jax.numpy as jnp
from jax import lax
from jax.experimental import pallas as pl
from jax.experimental.pallas import tpu as pltpu


def _round_up(n, m):
    return (n + m - 1) // m * m


def rnn_kernel(h0_ref, x_ref, w_ih_ref, w_hh_ref, b_rnn_ref, w_out_ref, b_out_ref,
               y_ref, h_out_ref,
               h_scratch, xw_scratch, hs_scratch,
               *, t_blk, batch_p):
    c = pl.program_id(0)

    # Load the initial hidden state once; it stays resident in VMEM scratch
    # across the (sequential) time-chunk grid.
    @pl.when(c == 0)
    def _():
        h_scratch[...] = h0_ref[...].astype(jnp.float32)

    # ---- Input projection, hoisted out of the recurrence ---------------------
    # One big matmul with M = T_BLK * batch_p (instead of T_BLK tiny M=batch ones).
    xw_scratch[...] = (
        jnp.dot(x_ref[...], w_ih_ref[...], preferred_element_type=jnp.float32)
        + b_rnn_ref[...])

    # ---- Serial recurrence: only h @ W_hh^T + bias-add + relu per step -------
    def step(t, h):
        off = pl.multiple_of(t * batch_p, batch_p)
        pre = xw_scratch[pl.ds(off, batch_p), :] + jnp.dot(
            h, w_hh_ref[...], preferred_element_type=jnp.float32)
        h_new = jnp.maximum(pre, 0.0)
        hs_scratch[pl.ds(off, batch_p), :] = h_new
        return h_new

    h_last = lax.fori_loop(0, t_blk, step, h_scratch[...], unroll=True)
    h_scratch[...] = h_last

    # ---- Output head, hoisted out of the recurrence ---------------------------
    # One big matmul per chunk; store is lane-dense (last dim padded to 128).
    y_ref[...] = (
        jnp.dot(hs_scratch[...], w_out_ref[...], preferred_element_type=jnp.float32)
        + b_out_ref[...]).astype(y_ref.dtype)

    # Final hidden: write once, on the last chunk only.
    @pl.when(c == pl.num_programs(0) - 1)
    def _():
        h_out_ref[...] = h_last.astype(h_out_ref.dtype)


def simple_rnn_forward(x, hidden, params, *, t_blk=None):
    """x: (batch, seq, input_size) f32; hidden: (1, batch, hidden_size) f32."""
    batch, seq, input_size = x.shape
    hidden_size = params["w_hh"].shape[0]
    output_size = params["w_out"].shape[0]

    # TPU-tile-friendly padded sizes: sublane (batch) -> multiple of 8,
    # lane (hidden / output) -> multiple of 128.
    batch_p = _round_up(batch, 8)
    hidden_p = _round_up(hidden_size, 128)
    output_p = _round_up(output_size, 128)

    # Time chunking to amortize per-grid-step overhead (~0.35us/step).
    if t_blk is None:
        t_blk = seq
        for cand in (128, 64, 32, 16, 8, 4, 2):
            if cand <= seq and seq % cand == 0:
                t_blk = cand
                break
    assert seq % t_blk == 0
    num_chunks = seq // t_blk

    f32 = jnp.float32
    # Pre-transpose + zero-pad weights once in the wrapper (free vs. the loop).
    # TODO(synk): for v6e/v7x, cast weights (and x) to bf16 here for the MXU
    # (keep f32 accumulation / f32 h_scratch); kept f32 for exact parity checks.
    w_ih_t = jnp.zeros((input_size, hidden_p), f32).at[:, :hidden_size].set(
        params["w_ih"].T.astype(f32))
    w_hh_t = jnp.zeros((hidden_p, hidden_p), f32).at[:hidden_size, :hidden_size].set(
        params["w_hh"].T.astype(f32))
    b_rnn = jnp.zeros((1, hidden_p), f32).at[0, :hidden_size].set(
        (params["b_ih"] + params["b_hh"]).astype(f32))
    w_out_t = jnp.zeros((hidden_p, output_p), f32).at[:hidden_size, :output_size].set(
        params["w_out"].T.astype(f32))
    b_out = jnp.zeros((1, output_p), f32).at[0, :output_size].set(
        params["b_out"].astype(f32))

    # x: batch-first -> time-major, pad batch, flatten to (seq * batch_p, input).
    x_tm = jnp.transpose(x, (1, 0, 2))                                # (seq, B, I)
    x_tm = jnp.pad(x_tm, ((0, 0), (0, batch_p - batch), (0, 0)))
    x2d = x_tm.reshape(seq * batch_p, input_size).astype(f32)

    h0 = jnp.pad(hidden[0],
                 ((0, batch_p - batch), (0, hidden_p - hidden_size))).astype(f32)

    kernel = functools.partial(rnn_kernel, t_blk=t_blk, batch_p=batch_p)

    grid_spec = pltpu.PrefetchScalarGridSpec(
        num_scalar_prefetch=0,
        grid=(num_chunks,),
        in_specs=[
            pl.BlockSpec((batch_p, hidden_p), lambda c: (0, 0)),            # h0
            pl.BlockSpec((t_blk * batch_p, input_size), lambda c: (c, 0)),  # x chunk
            pl.BlockSpec((input_size, hidden_p), lambda c: (0, 0)),         # W_ih^T
            pl.BlockSpec((hidden_p, hidden_p), lambda c: (0, 0)),           # W_hh^T
            pl.BlockSpec((1, hidden_p), lambda c: (0, 0)),                  # b_ih+b_hh
            pl.BlockSpec((hidden_p, output_p), lambda c: (0, 0)),           # W_out^T
            pl.BlockSpec((1, output_p), lambda c: (0, 0)),                  # b_out
        ],
        out_specs=[
            pl.BlockSpec((t_blk * batch_p, output_p), lambda c: (c, 0)),    # y chunk
            pl.BlockSpec((batch_p, hidden_p), lambda c: (0, 0)),            # h_final
        ],
        scratch_shapes=[
            pltpu.VMEM((batch_p, hidden_p), jnp.float32),          # carried hidden
            pltpu.VMEM((t_blk * batch_p, hidden_p), jnp.float32),  # x @ W_ih^T chunk
            pltpu.VMEM((t_blk * batch_p, hidden_p), jnp.float32),  # hidden-state chunk
        ],
    )

    y2d, h_final = pl.pallas_call(
        kernel,
        out_shape=(
            jax.ShapeDtypeStruct((seq * batch_p, output_p), x.dtype),
            jax.ShapeDtypeStruct((batch_p, hidden_p), x.dtype),
        ),
        grid_spec=grid_spec,
        compiler_params=pltpu.CompilerParams(
            # The time axis is a true recurrence -> must stay sequential.
            dimension_semantics=("arbitrary",),
        ),
    )(h0, x2d, w_ih_t, w_hh_t, b_rnn, w_out_t, b_out)

    y = y2d.reshape(seq, batch_p, output_p)[:, :batch, :output_size]
    y = jnp.transpose(y, (1, 0, 2))                      # back to (batch, seq, out)
    h_n = h_final[:batch, :hidden_size][None]            # (1, batch, hidden)
    return y, h_n


def reference_forward(x, hidden, params):
    """Pure-JAX reference matching torch.nn.RNN(relu) + Linear."""
    def step(h, x_t):
        h_new = jax.nn.relu(x_t @ params["w_ih"].T + params["b_ih"]
                            + h @ params["w_hh"].T + params["b_hh"])
        return h_new, h_new
    h_last, hs = jax.lax.scan(step, hidden[0], jnp.transpose(x, (1, 0, 2)))
    hs = jnp.transpose(hs, (1, 0, 2))                    # (batch, seq, hidden)
    y = hs @ params["w_out"].T + params["b_out"]
    return y, h_last[None]


if __name__ == "__main__":
    batch, seq = 2, 8
    input_size, hidden_size, output_size = 16, 32, 8

    key = jax.random.PRNGKey(0)
    ks = jax.random.split(key, 8)
    k_init = 1.0 / jnp.sqrt(hidden_size)
    params = {
        "w_ih": jax.random.uniform(ks[0], (hidden_size, input_size), jnp.float32, -k_init, k_init),
        "w_hh": jax.random.uniform(ks[1], (hidden_size, hidden_size), jnp.float32, -k_init, k_init),
        "b_ih": jax.random.uniform(ks[2], (hidden_size,), jnp.float32, -k_init, k_init),
        "b_hh": jax.random.uniform(ks[3], (hidden_size,), jnp.float32, -k_init, k_init),
        "w_out": jax.random.uniform(ks[4], (output_size, hidden_size), jnp.float32, -k_init, k_init),
        "b_out": jax.random.uniform(ks[5], (output_size,), jnp.float32, -k_init, k_init),
    }

    x = jax.random.normal(ks[6], (batch, seq, input_size), jnp.float32)
    hidden = jax.random.normal(ks[7], (1, batch, hidden_size), jnp.float32)

    y, h_n = simple_rnn_forward(x, hidden, params)
    y, h_n = jax.block_until_ready((y, h_n))

    y_ref, h_ref = reference_forward(x, hidden, params)
    assert y.shape == (batch, seq, output_size)
    assert h_n.shape == (1, batch, hidden_size)
    assert jnp.allclose(y, y_ref, atol=1e-5, rtol=1e-5)
    assert jnp.allclose(h_n, h_ref, atol=1e-5, rtol=1e-5)

    print("KERNEL_OK")
</pallas_src>

<mosaic_0001>
module attributes {stable_mosaic.version = 11 : i64} {
  func.func @rnn_kernel(%arg0: i32, %arg1: memref<8x128xf32, #tpu.memory_space<vmem>>, %arg2: memref<64x16xf32, #tpu.memory_space<vmem>>, %arg3: memref<16x128xf32, #tpu.memory_space<vmem>>, %arg4: memref<128x128xf32, #tpu.memory_space<vmem>>, %arg5: memref<1x128xf32, #tpu.memory_space<vmem>>, %arg6: memref<128x128xf32, #tpu.memory_space<vmem>>, %arg7: memref<1x128xf32, #tpu.memory_space<vmem>>, %arg8: memref<64x128xf32, #tpu.memory_space<vmem>>, %arg9: memref<8x128xf32, #tpu.memory_space<vmem>>, %arg10: memref<8x128xf32, #tpu.memory_space<vmem>>, %arg11: memref<64x128xf32, #tpu.memory_space<vmem>>, %arg12: memref<64x128xf32, #tpu.memory_space<vmem>>) attributes {dimension_semantics = [#tpu.dimension_semantics<arbitrary>], iteration_bounds = array<i64: 1>, scalar_prefetch = 0 : i64, scratch_operands = 3 : i64, tpu.core_type = #tpu.core_type<tc>, window_params = [{pipeline_mode = #tpu.pipeline_mode<synchronous>, transform_indices = @transform_0, window_bounds = array<i64: 8, 128>}, {transform_indices = @transform_1, window_bounds = array<i64: 64, 16>}, {pipeline_mode = #tpu.pipeline_mode<synchronous>, transform_indices = @transform_2, window_bounds = array<i64: 16, 128>}, {pipeline_mode = #tpu.pipeline_mode<synchronous>, transform_indices = @transform_3, window_bounds = array<i64: 128, 128>}, {pipeline_mode = #tpu.pipeline_mode<synchronous>, transform_indices = @transform_4, window_bounds = array<i64: 1, 128>}, {pipeline_mode = #tpu.pipeline_mode<synchronous>, transform_indices = @transform_5, window_bounds = array<i64: 128, 128>}, {pipeline_mode = #tpu.pipeline_mode<synchronous>, transform_indices = @transform_6, window_bounds = array<i64: 1, 128>}, {transform_indices = @transform_7, window_bounds = array<i64: 64, 128>}, {pipeline_mode = #tpu.pipeline_mode<synchronous>, transform_indices = @transform_8, window_bounds = array<i64: 8, 128>}]} {
    %c0_i32 = arith.constant 0 : i32
    %0 = arith.cmpi eq, %arg0, %c0_i32 : i32
    %1 = arith.extui %0 : i1 to i32
    %c0_i32_0 = arith.constant 0 : i32
    %2 = arith.cmpi ne, %1, %c0_i32_0 : i32
    scf.if %2 {
      %c0_80 = arith.constant 0 : index
      %c0_81 = arith.constant 0 : index
      %110 = vector.load %arg1[%c0_80, %c0_81] : memref<8x128xf32, #tpu.memory_space<vmem>>, vector<8x128xf32>
      %c0_82 = arith.constant 0 : index
      %c0_83 = arith.constant 0 : index
      %111 = vector.load %arg10[%c0_82, %c0_83] : memref<8x128xf32, #tpu.memory_space<vmem>>, vector<8x128xf32>
      tpu.vector_store %arg10[%c0_82, %c0_83], %110 {strides = array<i32>} : memref<8x128xf32, #tpu.memory_space<vmem>>, vector<8x128xf32>,
    } else {
    }
    %c0 = arith.constant 0 : index
    %c0_1 = arith.constant 0 : index
    %3 = vector.load %arg2[%c0, %c0_1] : memref<64x16xf32, #tpu.memory_space<vmem>>, vector<64x16xf32>
    %c0_2 = arith.constant 0 : index
    %c0_3 = arith.constant 0 : index
    %4 = vector.load %arg3[%c0_2, %c0_3] : memref<16x128xf32, #tpu.memory_space<vmem>>, vector<16x128xf32>
    %cst = arith.constant dense<0.000000e+00> : vector<64x128xf32>
    %5 = tpu.matmul %3, %4, %cst {dimension_numbers = #tpu.dot_dimension_numbers<[1], [0], [0], [1], [0, 0, 1, 1], [], []>} : vector<64x16xf32>, vector<16x128xf32>, vector<64x128xf32> -> vector<64x128xf32>
    %c0_4 = arith.constant 0 : index
    %c0_5 = arith.constant 0 : index
    %6 = vector.load %arg5[%c0_4, %c0_5] : memref<1x128xf32, #tpu.memory_space<vmem>>, vector<1x128xf32>
    %7 = vector.broadcast %6 : vector<1x128xf32> to vector<64x128xf32>
    %8 = arith.addf %5, %7 : vector<64x128xf32>
    %c0_6 = arith.constant 0 : index
    %c0_7 = arith.constant 0 : index
    %9 = vector.load %arg11[%c0_6, %c0_7] : memref<64x128xf32, #tpu.memory_space<vmem>>, vector<64x128xf32>
    tpu.vector_store %arg11[%c0_6, %c0_7], %8 {strides = array<i32>} : memref<64x128xf32, #tpu.memory_space<vmem>>, vector<64x128xf32>,
    %c0_8 = arith.constant 0 : index
    %c0_9 = arith.constant 0 : index
    %10 = vector.load %arg10[%c0_8, %c0_9] : memref<8x128xf32, #tpu.memory_space<vmem>>, vector<8x128xf32>
    %c0_i32_10 = arith.constant 0 : i32
    %c8_i32 = arith.constant 8 : i32
    %11 = arith.muli %c0_i32_10, %c8_i32 : i32
    %12 = tpu.assume_multiple %11, 8 : i32
    %13 = arith.index_cast %12 : i32 to index
    %c0_11 = arith.constant 0 : index
    %14 = vector.load %arg11[%13, %c0_11] : memref<64x128xf32, #tpu.memory_space<vmem>>, vector<8x128xf32>
    %c0_12 = arith.constant 0 : index
    %c0_13 = arith.constant 0 : index
    %15 = vector.load %arg4[%c0_12, %c0_13] : memref<128x128xf32, #tpu.memory_space<vmem>>, vector<128x128xf32>
    %cst_14 = arith.constant dense<0.000000e+00> : vector<8x128xf32>
    %16 = tpu.matmul %10, %15, %cst_14 {dimension_numbers = #tpu.dot_dimension_numbers<[1], [0], [0], [1], [0, 0, 1, 1], [], []>} : vector<8x128xf32>, vector<128x128xf32>, vector<8x128xf32> -> vector<8x128xf32>
    %17 = arith.addf %14, %16 : vector<8x128xf32>
    %cst_15 = arith.constant 0.000000e+00 : f32
    %18 = vector.broadcast %cst_15 : f32 to vector<8x128xf32>
    %19 = arith.maximumf %17, %18 : vector<8x128xf32>
    %20 = arith.index_cast %12 : i32 to index
    %c0_16 = arith.constant 0 : index
    %21 = vector.load %arg12[%20, %c0_16] : memref<64x128xf32, #tpu.memory_space<vmem>>, vector<8x128xf32>
    tpu.vector_store %arg12[%20, %c0_16], %19 {strides = array<i32>} : memref<64x128xf32, #tpu.memory_space<vmem>>, vector<8x128xf32>,
    %c1_i32 = arith.constant 1 : i32
    %c8_i32_17 = arith.constant 8 : i32
    %22 = arith.muli %c1_i32, %c8_i32_17 : i32
    %23 = tpu.assume_multiple %22, 8 : i32
    %24 = arith.index_cast %23 : i32 to index
    %c0_18 = arith.constant 0 : index
    %25 = vector.load %arg11[%24, %c0_18] : memref<64x128xf32, #tpu.memory_space<vmem>>, vector<8x128xf32>
    %c0_19 = arith.constant 0 : index
    %c0_20 = arith.constant 0 : index
    %26 = vector.load %arg4[%c0_19, %c0_20] : memref<128x128xf32, #tpu.memory_space<vmem>>, vector<128x128xf32>
    %cst_21 = arith.constant dense<0.000000e+00> : vector<8x128xf32>
    %27 = tpu.matmul %19, %26, %cst_21 {dimension_numbers = #tpu.dot_dimension_numbers<[1], [0], [0], [1], [0, 0, 1, 1], [], []>} : vector<8x128xf32>, vector<128x128xf32>, vector<8x128xf32> -> vector<8x128xf32>
    %28 = arith.addf %25, %27 : vector<8x128xf32>
    %cst_22 = arith.constant 0.000000e+00 : f32
    %29 = vector.broadcast %cst_22 : f32 to vector<8x128xf32>
    %30 = arith.maximumf %28, %29 : vector<8x128xf32>
    %31 = arith.index_cast %23 : i32 to index
    %c0_23 = arith.constant 0 : index
    %32 = vector.load %arg12[%31, %c0_23] : memref<64x128xf32, #tpu.memory_space<vmem>>, vector<8x128xf32>
    tpu.vector_store %arg12[%31, %c0_23], %30 {strides = array<i32>} : memref<64x128xf32, #tpu.memory_space<vmem>>, vector<8x128xf32>,
    %c2_i32 = arith.constant 2 : i32
    %c8_i32_24 = arith.constant 8 : i32
    %33 = arith.muli %c2_i32, %c8_i32_24 : i32
    %34 = tpu.assume_multiple %33, 8 : i32
    %35 = arith.index_cast %34 : i32 to index
    %c0_25 = arith.constant 0 : index
    %36 = vector.load %arg11[%35, %c0_25] : memref<64x128xf32, #tpu.memory_space<vmem>>, vector<8x128xf32>
    %c0_26 = arith.constant 0 : index
    %c0_27 = arith.constant 0 : index
    %37 = vector.load %arg4[%c0_26, %c0_27] : memref<128x128xf32, #tpu.memory_space<vmem>>, vector<128x128xf32>
    %cst_28 = arith.constant dense<0.000000e+00> : vector<8x128xf32>
    %38 = tpu.matmul %30, %37, %cst_28 {dimension_numbers = #tpu.dot_dimension_numbers<[1], [0], [0], [1], [0, 0, 1, 1], [], []>} : vector<8x128xf32>, vector<128x128xf32>, vector<8x128xf32> -> vector<8x128xf32>
    %39 = arith.addf %36, %38 : vector<8x128xf32>
    %cst_29 = arith.constant 0.000000e+00 : f32
    %40 = vector.broadcast %cst_29 : f32 to vector<8x128xf32>
    %41 = arith.maximumf %39, %40 : vector<8x128xf32>
    %42 = arith.index_cast %34 : i32 to index
    %c0_30 = arith.constant 0 : index
    %43 = vector.load %arg12[%42, %c0_30] : memref<64x128xf32, #tpu.memory_space<vmem>>, vector<8x128xf32>
    tpu.vector_store %arg12[%42, %c0_30], %41 {strides = array<i32>} : memref<64x128xf32, #tpu.memory_space<vmem>>, vector<8x128xf32>,
    %c3_i32 = arith.constant 3 : i32
    %c8_i32_31 = arith.constant 8 : i32
    %44 = arith.muli %c3_i32, %c8_i32_31 : i32
    %45 = tpu.assume_multiple %44, 8 : i32
    %46 = arith.index_cast %45 : i32 to index
    %c0_32 = arith.constant 0 : index
    %47 = vector.load %arg11[%46, %c0_32] : memref<64x128xf32, #tpu.memory_space<vmem>>, vector<8x128xf32>
    %c0_33 = arith.constant 0 : index
    %c0_34 = arith.constant 0 : index
    %48 = vector.load %arg4[%c0_33, %c0_34] : memref<128x128xf32, #tpu.memory_space<vmem>>, vector<128x128xf32>
    %cst_35 = arith.constant dense<0.000000e+00> : vector<8x128xf32>
    %49 = tpu.matmul %41, %48, %cst_35 {dimension_numbers = #tpu.dot_dimension_numbers<[1], [0], [0], [1], [0, 0, 1, 1], [], []>} : vector<8x128xf32>, vector<128x128xf32>, vector<8x128xf32> -> vector<8x128xf32>
    %50 = arith.addf %47, %49 : vector<8x128xf32>
    %cst_36 = arith.constant 0.000000e+00 : f32
    %51 = vector.broadcast %cst_36 : f32 to vector<8x128xf32>
    %52 = arith.maximumf %50, %51 : vector<8x128xf32>
    %53 = arith.index_cast %45 : i32 to index
    %c0_37 = arith.constant 0 : index
    %54 = vector.load %arg12[%53, %c0_37] : memref<64x128xf32, #tpu.memory_space<vmem>>, vector<8x128xf32>
    tpu.vector_store %arg12[%53, %c0_37], %52 {strides = array<i32>} : memref<64x128xf32, #tpu.memory_space<vmem>>, vector<8x128xf32>,
    %c4_i32 = arith.constant 4 : i32
    %c8_i32_38 = arith.constant 8 : i32
    %55 = arith.muli %c4_i32, %c8_i32_38 : i32
    %56 = tpu.assume_multiple %55, 8 : i32
    %57 = arith.index_cast %56 : i32 to index
    %c0_39 = arith.constant 0 : index
    %58 = vector.load %arg11[%57, %c0_39] : memref<64x128xf32, #tpu.memory_space<vmem>>, vector<8x128xf32>
    %c0_40 = arith.constant 0 : index
    %c0_41 = arith.constant 0 : index
    %59 = vector.load %arg4[%c0_40, %c0_41] : memref<128x128xf32, #tpu.memory_space<vmem>>, vector<128x128xf32>
    %cst_42 = arith.constant dense<0.000000e+00> : vector<8x128xf32>
    %60 = tpu.matmul %52, %59, %cst_42 {dimension_numbers = #tpu.dot_dimension_numbers<[1], [0], [0], [1], [0, 0, 1, 1], [], []>} : vector<8x128xf32>, vector<128x128xf32>, vector<8x128xf32> -> vector<8x128xf32>
    %61 = arith.addf %58, %60 : vector<8x128xf32>
    %cst_43 = arith.constant 0.000000e+00 : f32
    %62 = vector.broadcast %cst_43 : f32 to vector<8x128xf32>
    %63 = arith.maximumf %61, %62 : vector<8x128xf32>
    %64 = arith.index_cast %56 : i32 to index
    %c0_44 = arith.constant 0 : index
    %65 = vector.load %arg12[%64, %c0_44] : memref<64x128xf32, #tpu.memory_space<vmem>>, vector<8x128xf32>
    tpu.vector_store %arg12[%64, %c0_44], %63 {strides = array<i32>} : memref<64x128xf32, #tpu.memory_space<vmem>>, vector<8x128xf32>,
    %c5_i32 = arith.constant 5 : i32
    %c8_i32_45 = arith.constant 8 : i32
    %66 = arith.muli %c5_i32, %c8_i32_45 : i32
    %67 = tpu.assume_multiple %66, 8 : i32
    %68 = arith.index_cast %67 : i32 to index
    %c0_46 = arith.constant 0 : index
    %69 = vector.load %arg11[%68, %c0_46] : memref<64x128xf32, #tpu.memory_space<vmem>>, vector<8x128xf32>
    %c0_47 = arith.constant 0 : index
    %c0_48 = arith.constant 0 : index
    %70 = vector.load %arg4[%c0_47, %c0_48] : memref<128x128xf32, #tpu.memory_space<vmem>>, vector<128x128xf32>
    %cst_49 = arith.constant dense<0.000000e+00> : vector<8x128xf32>
    %71 = tpu.matmul %63, %70, %cst_49 {dimension_numbers = #tpu.dot_dimension_numbers<[1], [0], [0], [1], [0, 0, 1, 1], [], []>} : vector<8x128xf32>, vector<128x128xf32>, vector<8x128xf32> -> vector<8x128xf32>
    %72 = arith.addf %69, %71 : vector<8x128xf32>
    %cst_50 = arith.constant 0.000000e+00 : f32
    %73 = vector.broadcast %cst_50 : f32 to vector<8x128xf32>
    %74 = arith.maximumf %72, %73 : vector<8x128xf32>
    %75 = arith.index_cast %67 : i32 to index
    %c0_51 = arith.constant 0 : index
    %76 = vector.load %arg12[%75, %c0_51] : memref<64x128xf32, #tpu.memory_space<vmem>>, vector<8x128xf32>
    tpu.vector_store %arg12[%75, %c0_51], %74 {strides = array<i32>} : memref<64x128xf32, #tpu.memory_space<vmem>>, vector<8x128xf32>,
    %c6_i32 = arith.constant 6 : i32
    %c8_i32_52 = arith.constant 8 : i32
    %77 = arith.muli %c6_i32, %c8_i32_52 : i32
    %78 = tpu.assume_multiple %77, 8 : i32
    %79 = arith.index_cast %78 : i32 to index
    %c0_53 = arith.constant 0 : index
    %80 = vector.load %arg11[%79, %c0_53] : memref<64x128xf32, #tpu.memory_space<vmem>>, vector<8x128xf32>
    %c0_54 = arith.constant 0 : index
    %c0_55 = arith.constant 0 : index
    %81 = vector.load %arg4[%c0_54, %c0_55] : memref<128x128xf32, #tpu.memory_space<vmem>>, vector<128x128xf32>
    %cst_56 = arith.constant dense<0.000000e+00> : vector<8x128xf32>
    %82 = tpu.matmul %74, %81, %cst_56 {dimension_numbers = #tpu.dot_dimension_numbers<[1], [0], [0], [1], [0, 0, 1, 1], [], []>} : vector<8x128xf32>, vector<128x128xf32>, vector<8x128xf32> -> vector<8x128xf32>
    %83 = arith.addf %80, %82 : vector<8x128xf32>
    %cst_57 = arith.constant 0.000000e+00 : f32
    %84 = vector.broadcast %cst_57 : f32 to vector<8x128xf32>
    %85 = arith.maximumf %83, %84 : vector<8x128xf32>
    %86 = arith.index_cast %78 : i32 to index
    %c0_58 = arith.constant 0 : index
    %87 = vector.load %arg12[%86, %c0_58] : memref<64x128xf32, #tpu.memory_space<vmem>>, vector<8x128xf32>
    tpu.vector_store %arg12[%86, %c0_58], %85 {strides = array<i32>} : memref<64x128xf32, #tpu.memory_space<vmem>>, vector<8x128xf32>,
    %c7_i32 = arith.constant 7 : i32
    %c8_i32_59 = arith.constant 8 : i32
    %88 = arith.muli %c7_i32, %c8_i32_59 : i32
    %89 = tpu.assume_multiple %88, 8 : i32
    %90 = arith.index_cast %89 : i32 to index
    %c0_60 = arith.constant 0 : index
    %91 = vector.load %arg11[%90, %c0_60] : memref<64x128xf32, #tpu.memory_space<vmem>>, vector<8x128xf32>
    %c0_61 = arith.constant 0 : index
    %c0_62 = arith.constant 0 : index
    %92 = vector.load %arg4[%c0_61, %c0_62] : memref<128x128xf32, #tpu.memory_space<vmem>>, vector<128x128xf32>
    %cst_63 = arith.constant dense<0.000000e+00> : vector<8x128xf32>
    %93 = tpu.matmul %85, %92, %cst_63 {dimension_numbers = #tpu.dot_dimension_numbers<[1], [0], [0], [1], [0, 0, 1, 1], [], []>} : vector<8x128xf32>, vector<128x128xf32>, vector<8x128xf32> -> vector<8x128xf32>
    %94 = arith.addf %91, %93 : vector<8x128xf32>
    %cst_64 = arith.constant 0.000000e+00 : f32
    %95 = vector.broadcast %cst_64 : f32 to vector<8x128xf32>
    %96 = arith.maximumf %94, %95 : vector<8x128xf32>
    %97 = arith.index_cast %89 : i32 to index
    %c0_65 = arith.constant 0 : index
    %98 = vector.load %arg12[%97, %c0_65] : memref<64x128xf32, #tpu.memory_space<vmem>>, vector<8x128xf32>
    tpu.vector_store %arg12[%97, %c0_65], %96 {strides = array<i32>} : memref<64x128xf32, #tpu.memory_space<vmem>>, vector<8x128xf32>,
    %c8_i32_66 = arith.constant 8 : i32
    %c0_67 = arith.constant 0 : index
    %c0_68 = arith.constant 0 : index
    %99 = vector.load %arg10[%c0_67, %c0_68] : memref<8x128xf32, #tpu.memory_space<vmem>>, vector<8x128xf32>
    tpu.vector_store %arg10[%c0_67, %c0_68], %96 {strides = array<i32>} : memref<8x128xf32, #tpu.memory_space<vmem>>, vector<8x128xf32>,
    %c0_69 = arith.constant 0 : index
    %c0_70 = arith.constant 0 : index
    %100 = vector.load %arg12[%c0_69, %c0_70] : memref<64x128xf32, #tpu.memory_space<vmem>>, vector<64x128xf32>
    %c0_71 = arith.constant 0 : index
    %c0_72 = arith.constant 0 : index
    %101 = vector.load %arg6[%c0_71, %c0_72] : memref<128x128xf32, #tpu.memory_space<vmem>>, vector<128x128xf32>
    %cst_73 = arith.constant dense<0.000000e+00> : vector<64x128xf32>
    %102 = tpu.matmul %100, %101, %cst_73 {dimension_numbers = #tpu.dot_dimension_numbers<[1], [0], [0], [1], [0, 0, 1, 1], [], []>} : vector<64x128xf32>, vector<128x128xf32>, vector<64x128xf32> -> vector<64x128xf32>
    %c0_74 = arith.constant 0 : index
    %c0_75 = arith.constant 0 : index
    %103 = vector.load %arg7[%c0_74, %c0_75] : memref<1x128xf32, #tpu.memory_space<vmem>>, vector<1x128xf32>
    %104 = vector.broadcast %103 : vector<1x128xf32> to vector<64x128xf32>
    %105 = arith.addf %102, %104 : vector<64x128xf32>
    %c0_76 = arith.constant 0 : index
    %c0_77 = arith.constant 0 : index
    %106 = vector.load %arg8[%c0_76, %c0_77] : memref<64x128xf32, #tpu.memory_space<vmem>>, vector<64x128xf32>
    tpu.vector_store %arg8[%c0_76, %c0_77], %105 {strides = array<i32>} : memref<64x128xf32, #tpu.memory_space<vmem>>, vector<64x128xf32>,
    %c0_i32_78 = arith.constant 0 : i32
    %107 = arith.cmpi eq, %arg0, %c0_i32_78 : i32
    %108 = arith.extui %107 : i1 to i32
    %c0_i32_79 = arith.constant 0 : i32
    %109 = arith.cmpi ne, %108, %c0_i32_79 : i32
    scf.if %109 {
      %c0_80 = arith.constant 0 : index
      %c0_81 = arith.constant 0 : index
      %110 = vector.load %arg9[%c0_80, %c0_81] : memref<8x128xf32, #tpu.memory_space<vmem>>, vector<8x128xf32>
      tpu.vector_store %arg9[%c0_80, %c0_81], %96 {strides = array<i32>} : memref<8x128xf32, #tpu.memory_space<vmem>>, vector<8x128xf32>,
    } else {
    }
    return
  }
  func.func @transform_0(%arg0: i32) -> (i32, i32) {
    %c0_i32 = arith.constant 0 : i32
    %c0_i32_0 = arith.constant 0 : i32
    %c0_i32_1 = arith.constant 0 : i32
    return %c0_i32, %c0_i32_0 : i32, i32
  }
  func.func @transform_1(%arg0: i32) -> (i32, i32) {
    %c0_i32 = arith.constant 0 : i32
    %c0_i32_0 = arith.constant 0 : i32
    return %arg0, %c0_i32 : i32, i32
  }
  func.func @transform_2(%arg0: i32) -> (i32, i32) {
    %c0_i32 = arith.constant 0 : i32
    %c0_i32_0 = arith.constant 0 : i32
    %c0_i32_1 = arith.constant 0 : i32
    return %c0_i32, %c0_i32_0 : i32, i32
  }
  func.func @transform_3(%arg0: i32) -> (i32, i32) {
    %c0_i32 = arith.constant 0 : i32
    %c0_i32_0 = arith.constant 0 : i32
    %c0_i32_1 = arith.constant 0 : i32
    return %c0_i32, %c0_i32_0 : i32, i32
  }
  func.func @transform_4(%arg0: i32) -> (i32, i32) {
    %c0_i32 = arith.constant 0 : i32
    %c0_i32_0 = arith.constant 0 : i32
    %c0_i32_1 = arith.constant 0 : i32
    return %c0_i32, %c0_i32_0 : i32, i32
  }
  func.func @transform_5(%arg0: i32) -> (i32, i32) {
    %c0_i32 = arith.constant 0 : i32
    %c0_i32_0 = arith.constant 0 : i32
    %c0_i32_1 = arith.constant 0 : i32
    return %c0_i32, %c0_i32_0 : i32, i32
  }
  func.func @transform_6(%arg0: i32) -> (i32, i32) {
    %c0_i32 = arith.constant 0 : i32
    %c0_i32_0 = arith.constant 0 : i32
    %c0_i32_1 = arith.constant 0 : i32
    return %c0_i32, %c0_i32_0 : i32, i32
  }
  func.func @transform_7(%arg0: i32) -> (i32, i32) {
    %c0_i32 = arith.constant 0 : i32
    %c0_i32_0 = arith.constant 0 : i32
    return %arg0, %c0_i32 : i32, i32
  }
  func.func @transform_8(%arg0: i32) -> (i32, i32) {
    %c0_i32 = arith.constant 0 : i32
    %c0_i32_0 = arith.constant 0 : i32
    %c0_i32_1 = arith.constant 0 : i32
    return %c0_i32, %c0_i32_0 : i32, i32
  }
}

</mosaic_0001>

<bundles_post_ra>
// kernel: tpu_custom_call.1
= control target key start
LH: loop header
LB: loop body
LE: loop exit
PB: predicated region body
PF: predicated region fallthrough
CT: control target
= control target key end

     0   :  { %14 = vsyncpa [#allocation6], 0  ;;  %s2363_s0 = inlined_call_operand.vmem [shape: f32[8,128], index: 0, kind: input, shape index: {}]   ;;  %s2364_s1 = inlined_call_operand.vmem [shape: f32[64,16], index: 1, kind: input, shape index: {}]   ;;  %s2365_s2 = inlined_call_operand.vmem [shape: f32[16,128], index: 2, kind: input, shape index: {}]   ;;  %s2366_s3 = inlined_call_operand.hbm [shape: f32[128,128], index: 3, kind: input, shape index: {}]   ;;  %s2367_s4 = inlined_call_operand.vmem [shape: f32[1,128], index: 4, kind: input, shape index: {}]   ;;  %s2368_s5 = inlined_call_operand.hbm [shape: f32[128,128], index: 5, kind: input, shape index: {}]   ;;  %s2369_s6 = inlined_call_operand.vmem [shape: f32[1,128], index: 6, kind: input, shape index: {}]   ;;  %s2370_s7 = inlined_call_operand.hbm [shape: f32[64,128], index: 7, kind: output, shape index: {0}]   ;;  %s2371_s8 = inlined_call_operand.hbm [shape: f32[8,128], index: 8, kind: output, shape index: {1}]  }
   0x1   :  { %15 = vsyncpa [#allocation9], 0 }
   0x2   :  { %16 = vsyncpa [#allocation7], 0 }
   0x3   :  { %17 = vsyncpa [#allocation12], 0  ;;  %s1988_s27 = smov [#allocation5]   ;;  %s1892_s9 = scalar_lea.hbm %s2366_s3, 2048 }
   0x4   :  { %s29_s28 = sshll.u32 %s1988_s27, 4  ;;  %p1893_p0 = scmp.ne.s32.totalorder %s2366_s3, %s1892_s9  ;;  %s30_s28 = int_to_ptr.vmem [resolvable:$true] %s29_s28 }
   0x5   :  { %p1896_p1 = scmp.lt.u32.totalorder %s1892_s9, %s2366_s3 }
   0x7   :  { %p1898_p2 = pnand %p1896_p1, %p1893_p0 }
   0x9   :  { %1901 = shalt.err (!%p1898_p2)
}
   0xa   :  { %s1902_s14 = scalar_lea.vmem %s30_s28, 2048  ;;  %p1907_p4 = scmp.lt.s32.totalorder %s30_s28, %s30_s28 }
   0xb   :  { %p1903_p3 = scmp.ne.s32.totalorder %s30_s28, %s1902_s14  ;;  %p1908_p5 = scmp.lt.s32.totalorder %s1902_s14, %s1902_s14 }
   0xd   :  { %p1909_p6 = por %p1908_p5, %p1907_p4 }
   0xf   :  { %p1910_p7 = pnand %p1909_p6, %p1903_p3 }
  0x11   :  { %1913 = shalt.err (!%p1910_p7)
}
  0x12   :  { %s1989_s15 = smov 128   ;;  %s1990_s16 = smov 8  }
  0x13   :  { %35 = dma.hbm_to_vmem [thread:$0]  %s2366_s3, 2048, %s30_s28, [#allocation6], %s1989_s15, %s1989_s15, %s1990_s16  }
  0x14   :  { %s1991_s19 = smov [#allocation8]   ;;  %s1914_s23 = scalar_lea.hbm %s2368_s5, 2048 }
  0x15   :  { %s43_s20 = sshll.u32 %s1991_s19, 4  ;;  %p1915_p8 = scmp.ne.s32.totalorder %s2368_s5, %s1914_s23  ;;  %s44_s20 = int_to_ptr.vmem [resolvable:$true] %s43_s20 }
  0x16   :  { %p1918_p9 = scmp.lt.u32.totalorder %s1914_s23, %s2368_s5 }
  0x18   :  { %p1920_p10 = pnand %p1918_p9, %p1915_p8 }
  0x1a   :  { %1923 = shalt.err (!%p1920_p10)
}
  0x1b   :  { %s1924_s29 = scalar_lea.vmem %s44_s20, 2048  ;;  %p1929_p12 = scmp.lt.s32.totalorder %s44_s20, %s44_s20 }
  0x1c   :  { %p1925_p11 = scmp.ne.s32.totalorder %s44_s20, %s1924_s29  ;;  %p1930_p13 = scmp.lt.s32.totalorder %s1924_s29, %s1924_s29 }
  0x1e   :  { %p1931_p0 = por %p1930_p13, %p1929_p12 }
  0x20   :  { %p1932_p1 = pnand %p1931_p0, %p1925_p11 }
  0x22   :  { %1935 = shalt.err (!%p1932_p1)
}
  0x23   :  { %49 = dma.hbm_to_vmem [thread:$0]  %s2368_s5, 2048, %s44_s20, [#allocation9], %s1989_s15, %s1989_s15, %s1990_s16  }
  0x24   :  { %1980 = dma.done.wait [#allocation6], 2048  }
  0x25   :  { %1981 = vsyncadd [#allocation6], 4294965248 }
  0x26   :  { %1982 = dma.done.wait [#allocation9], 2048  }
  0x27   :  { %1983 = vsyncadd [#allocation9], 4294965248  ;;  %v1992_v0 = vmov 0.0|0.0   ;;  %vm1993_vm0 = vmmov 0   ;;  %v1994_v1 = vmov 0.0   ;;  %v221_v2 = vld [vmem:[#allocation5] sm:$0xff] }
  0x28   :  { %1659 = vmatprep.subr.bf16.mxu0 %v1992_v0  ;;  %1363 = vmatprep.mubr.msk.f32.mxu0 %vm1993_vm0, %v1994_v1  ;;  %v222_v3 = vld [vmem:[#allocation5 + $0x8] sm:$0xff]  ;;  %v223_v4 = vld [vmem:[#allocation5 + $0x10] sm:$0xff]  ;;  %v224_v6 = vld [vmem:[#allocation5 + $0x18] sm:$0xff]  ;;  %vm81_vm1 = vcmask 130048  }
  0x29   :  { %v2075_v5 = vpack.c.bf16 %v222_v3, %v221_v2  ;;  %v2078_v7 = vpack.c.bf16 %v224_v6, %v223_v4  ;;  %v225_v8 = vld [vmem:[#allocation5 + $0x20] sm:$0xff]  ;;  %v226_v9 = vld [vmem:[#allocation5 + $0x28] sm:$0xff]  ;;  %v227_v15 = vld [vmem:[#allocation5 + $0x30] sm:$0xff] }
  0x2a   :  { %v72_v10 = vld [vmem:[%s2365_s2] sm:$0xff]  ;;  %v73_v11 = vld [vmem:[%s2365_s2 + $0x8] sm:$0xff]  ;;  %v2092_v14 = vpack.c.bf16 %v226_v9, %v225_v8  ;;  %v228_v16 = vld [vmem:[#allocation5 + $0x38] sm:$0xff] }
  0x2b   :  { %1661 = vmatpush3.bf16.msra.mxu0 %v2075_v5  ;;  %v1655_v12 = vpack.c.bf16 %v73_v11, %v72_v10  ;;  %v64_v13 = vld [vmem:[%s2364_s1] sm:$0xff]  ;;  %v65_v17 = vld [vmem:[%s2364_s1 + $0x8] sm:$0xff]  ;;  %v2100_v18 = vpack.c.bf16 %v228_v16, %v227_v15  ;;  %v231_v22 = vld [vmem:[#allocation5 + $0x50] sm:$0xff] }
  0x2c   :  { %1662 = vmatprep.subr.bf16.mxu0 %v1992_v0  ;;  %1319 = vmatprep.mubr.msk.f32.mxu1 %vm81_vm1, %v64_v13  ;;  %v229_v19 = vld [vmem:[#allocation5 + $0x40] sm:$0xff]  ;;  %v230_v20 = vld [vmem:[#allocation5 + $0x48] sm:$0xff]  ;;  %v232_v23 = vld [vmem:[#allocation5 + $0x58] sm:$0xff] }
  0x2d   :  { %1656 = vmatprep.subr.bf16.mxu1 %v1655_v12  ;;  %v2107_v21 = vpack.c.bf16 %v230_v20, %v229_v19  ;;  %v2113_v24 = vpack.c.bf16 %v232_v23, %v231_v22  ;;  %v233_v25 = vld [vmem:[#allocation5 + $0x60] sm:$0xff]  ;;  %v234_v26 = vld [vmem:[#allocation5 + $0x68] sm:$0xff]  ;;  %v235_v28 = vld [vmem:[#allocation5 + $0x70] sm:$0xff] }
  0x2e   :  { %1658 = vmatpush3.bf16.msra.mxu1 %v1655_v12  ;;  %v2119_v27 = vpack.c.bf16 %v234_v26, %v233_v25  ;;  %v236_v29 = vld [vmem:[#allocation5 + $0x78] sm:$0xff]  ;;  %v62_v31 = vld [vmem:[%s2363_s0] sm:$0xff]  ;;  %v66_v32 = vld [vmem:[%s2364_s1 + $0x10] sm:$0xff] }
  0x2f   :  { %1664 = vmatpush3.bf16.msra.mxu0 %v2078_v7  ;;  %1707 = vmatprep.subr.bf16.mxu1 %v1992_v0  ;;  %v2125_v30 = vpack.c.bf16 %v236_v29, %v235_v28  ;;  %v67_v33 = vld [vmem:[%s2364_s1 + $0x18] sm:$0xff]  ;;  %v68_v34 = vld [vmem:[%s2364_s1 + $0x20] sm:$0xff]  ;;  %v69_v35 = vld [vmem:[%s2364_s1 + $0x28] sm:$0xff] }
  0x30   :  { %1665 = vmatprep.subr.bf16.mxu0 %v1992_v0  ;;  %v70_v36 = vld [vmem:[%s2364_s1 + $0x30] sm:$0xff]  ;;  %v71_v37 = vld [vmem:[%s2364_s1 + $0x38] sm:$0xff]  ;;  %v2188_v40 = vld [vmem:[%s2367_s4] ss:$0 sm:$0xff] }
  0x31   :  { %1320 = vmatmul.mubr.msk.f32.vlgmr.msra.gmra.mrb[0].mxu1 %vm81_vm1, %v65_v17  ;;  %v966_v15 = vld [vmem:[#allocation8 + $0x18] sm:$0xff]  ;;  %v967_v20 = vld [vmem:[#allocation8 + $0x20] sm:$0xff]  ;;  %v969_v22 = vld [vmem:[#allocation8 + $0x30] sm:$0xff] }
  0x32   :  { %1709 = vmatpush3.bf16.msra.mxu1 %v2075_v5  ;;  %1322 = vmatprep.mubr.msk.f32.mxu1 %vm81_vm1, %v66_v32  ;;  %v970_v23 = vld [vmem:[#allocation8 + $0x38] sm:$0xff]  ;;  %v971_v25 = vld [vmem:[#allocation8 + $0x40] sm:$0xff]  ;;  %v972_v26 = vld [vmem:[#allocation8 + $0x48] sm:$0xff] }
  0x33   :  { %1667 = vmatpush3.bf16.msra.mxu0 %v2092_v14  ;;  %1710 = vmatprep.subr.bf16.mxu1 %v1992_v0  ;;  %v973_v28 = vld [vmem:[#allocation8 + $0x50] sm:$0xff]  ;;  %v974_v29 = vld [vmem:[#allocation8 + $0x58] sm:$0xff]  ;;  %v976_v32 = vld [vmem:[#allocation8 + $0x68] sm:$0xff] }
  0x34   :  { %1668 = vmatprep.subr.bf16.mxu0 %v1992_v0 }
  0x35   :  { %1323 = vmatmul.mubr.msk.f32.gmra.mrb[2].mxu1 %vm81_vm1, %v67_v33 }
  0x36   :  { %1712 = vmatpush3.bf16.msra.mxu1 %v2078_v7  ;;  %1325 = vmatprep.mubr.msk.f32.mxu1 %vm81_vm1, %v68_v34  ;;  %v977_v34 = vld [vmem:[#allocation8 + $0x70] sm:$0xff] }
  0x37   :  { %1670 = vmatpush3.bf16.msra.mxu0 %v2100_v18  ;;  %1713 = vmatprep.subr.bf16.mxu1 %v1992_v0 }
  0x38   :  { %1671 = vmatprep.subr.bf16.mxu0 %v1992_v0 }
  0x39   :  { %1326 = vmatmul.mubr.msk.f32.gmra.mrb[4].mxu1 %vm81_vm1, %v69_v35  ;;  %v978_v35 = vld [vmem:[#allocation8 + $0x78] sm:$0xff] }
  0x3a   :  { %1715 = vmatpush3.bf16.msra.mxu1 %v2092_v14  ;;  %1328 = vmatprep.mubr.msk.f32.mxu1 %vm81_vm1, %v70_v36  ;;  %v1879_v36 = vpack.c.bf16 %v978_v35, %v977_v34 }
  0x3b   :  { %1673 = vmatpush3.bf16.msra.mxu0 %v2107_v21  ;;  %1716 = vmatprep.subr.bf16.mxu1 %v1992_v0 }
  0x3c   :  { %1674 = vmatprep.subr.bf16.mxu0 %v1992_v0 }
  0x3d   :  { %1329 = vmatmul.mubr.msk.f32.gmra.mrb[6].mxu1 %vm81_vm1, %v71_v37 }
  0x3e   :  { %1718 = vmatpush3.bf16.msra.mxu1 %v2100_v18  ;;  %1433 = vmatprep.mubr.msk.f32.mxu1 %vm1993_vm0, %v1994_v1 }
  0x3f   :  { %1676 = vmatpush3.bf16.msra.mxu0 %v2113_v24  ;;  %1719 = vmatprep.subr.bf16.mxu1 %v1992_v0 }
  0x40   :  { %1677 = vmatprep.subr.bf16.mxu0 %v1992_v0 }
  0x42   :  { %1721 = vmatpush3.bf16.msra.mxu1 %v2107_v21 }
  0x43   :  { %1679 = vmatpush3.bf16.msra.mxu0 %v2119_v27  ;;  %1722 = vmatprep.subr.bf16.mxu1 %v1992_v0 }
  0x44   :  { %1680 = vmatprep.subr.bf16.mxu0 %v1992_v0 }
  0x46   :  { %1724 = vmatpush3.bf16.msra.mxu1 %v2113_v24 }
  0x47   :  { %1682 = vmatpush3.bf16.msra.mxu0 %v2125_v30  ;;  %1725 = vmatprep.subr.bf16.mxu1 %v1992_v0 }
  0x48   :  { %1683 = vmatprep.subr.bf16.mxu0 %v1992_v0 }
  0x4a   :  { %1364 = vmatmul.mubr.f32.vlgmr.msra.gmra.mrb[0].mxu0 %v62_v31  ;;  %1727 = vmatpush3.bf16.msra.mxu1 %v2119_v27  ;;  %v975_v31 = vld [vmem:[#allocation8 + $0x60] sm:$0xff] }
  0x4b   :  { %1685 = vmatpush3.bf16.msra.mxu0 %v2075_v5  ;;  %1398 = vmatprep.mubr.msk.f32.mxu0 %vm1993_vm0, %v1994_v1  ;;  %v1875_v33 = vpack.c.bf16 %v976_v32, %v975_v31 }
  0x4c   :  { %1686 = vmatprep.subr.bf16.mxu0 %v1992_v0  ;;  %1728 = vmatprep.subr.bf16.mxu1 %v1992_v0 }
  0x4e   :  { %1730 = vmatpush3.bf16.msra.mxu1 %v2125_v30 }
  0x4f   :  { %1688 = vmatpush3.bf16.msra.mxu0 %v2078_v7  ;;  %1755 = vmatprep.subr.bf16.mxu1 %v1992_v0 }
  0x50   :  { %1689 = vmatprep.subr.bf16.mxu0 %v1992_v0 }
  0x53   :  { %1691 = vmatpush3.bf16.msra.mxu0 %v2092_v14 }
  0x54   :  { %1692 = vmatprep.subr.bf16.mxu0 %v1992_v0 }
  0x57   :  { %1694 = vmatpush3.bf16.msra.mxu0 %v2100_v18 }
  0x58   :  { %1695 = vmatprep.subr.bf16.mxu0 %v1992_v0 }
  0x5b   :  { %1697 = vmatpush3.bf16.msra.mxu0 %v2107_v21 }
  0x5c   :  { %1698 = vmatprep.subr.bf16.mxu0 %v1992_v0 }
  0x5f   :  { %1700 = vmatpush3.bf16.msra.mxu0 %v2113_v24 }
  0x60   :  { %1701 = vmatprep.subr.bf16.mxu0 %v1992_v0 }
  0x63   :  { %1703 = vmatpush3.bf16.msra.mxu0 %v2119_v27 }
  0x64   :  { %1704 = vmatprep.subr.bf16.mxu0 %v1992_v0 }
  0x67   :  { %1706 = vmatpush3.bf16.msra.mxu0 %v2125_v30 }
  0x68   :  { %1731 = vmatprep.subr.bf16.mxu0 %v1992_v0 }
 0x104   :  { %v1321_v38 = vpop.f32.mrb[0].mxu1 }
 0x105   :  { %v172_v39 = vpop.f32.mrb[1].mxu1  ;;  %v178_v52 = vadd.f32 %v1321_v38, %v2188_v40 }
 0x106   :  { %v173_v41 = vadd.f32 %v2188_v40, %v172_v39 }
 0x108   :  { %v1324_v46 = vpop.f32.mrb[2].mxu1 }
 0x109   :  { %v182_v47 = vpop.f32.mrb[3].mxu1  ;;  %v188_v62 = vadd.f32 %v1324_v46, %v2188_v40 }
 0x10a   :  { %v183_v57 = vadd.f32 %v2188_v40, %v182_v47 }
 0x10c   :  { %v2214_v48 = vpop.f32.mrb[4].mxu1 }
 0x10d   :  { %v2216_v49 = vpop.f32.mrb[5].mxu1  ;;  %v198_v12 = vadd.f32 %v2214_v48, %v2188_v40 }
 0x10e   :  { %v193_v6 = vadd.f32 %v2188_v40, %v2216_v49 }
 0x110   :  { %v2218_v50 = vpop.f32.mrb[6].mxu1 }
 0x111   :  { %v2220_v51 = vpop.f32.mrb[7].mxu1 }
 0x112   :  { %v203_v37 = vadd.f32 %v2188_v40, %v2220_v51 }
 0x11d   :  { %v303_v42 = vpop.f32.mrb[0].mxu0 }
 0x11e   :  { %v2191_v43 = vadd.f32 %v303_v42, %v173_v41  ;;  %v1365_v44 = vpop.f32.mrb[1].mxu0 }
 0x120   :  { %v308_v45 = vmax.f32 %v2191_v43, 0.0  ;;  %v1144_v43 = vld [vmem:[%s2369_s6] ss:$0 sm:$0xff]  ;;  %s1995_s6 = smov [#allocation11]  }
 0x121   :  { %s1121_s5 = sshll.u32 %s1995_s6, 4  ;;  %s1122_s5 = int_to_ptr.vmem [resolvable:$true] %s1121_s5 }
 0x122   :  { %1399 = vmatmul.mubr.f32.vlgmr.msra.gmra.mrb[2].mxu0 %v308_v45  ;;  %s1936_s30 = scalar_lea.vmem %s1122_s5, 128  ;;  %p1941_p3 = scmp.lt.s32.totalorder %s1122_s5, %s1122_s5 }
 0x123   :  { %1733 = vmatpush3.bf16.msra.mxu0 %v2075_v5  ;;  %1468 = vmatprep.mubr.msk.f32.mxu0 %vm1993_vm0, %v1994_v1  ;;  %p1937_p2 = scmp.ne.s32.totalorder %s1122_s5, %s1936_s30  ;;  %p1942_p4 = scmp.lt.s32.totalorder %s1936_s30, %s1936_s30 }
 0x124   :  { %1734 = vmatprep.subr.bf16.mxu0 %v1992_v0 }
 0x125   :  { %p1943_p5 = por %p1942_p4, %p1941_p3 }
 0x127   :  { %1736 = vmatpush3.bf16.msra.mxu0 %v2078_v7  ;;  %p1944_p6 = pnand %p1943_p5, %p1937_p2 }
 0x128   :  { %1737 = vmatprep.subr.bf16.mxu0 %v1992_v0 }
 0x12b   :  { %1739 = vmatpush3.bf16.msra.mxu0 %v2092_v14 }
 0x12c   :  { %1740 = vmatprep.subr.bf16.mxu0 %v1992_v0 }
 0x12f   :  { %1742 = vmatpush3.bf16.msra.mxu0 %v2100_v18 }
 0x130   :  { %1743 = vmatprep.subr.bf16.mxu0 %v1992_v0 }
 0x133   :  { %1745 = vmatpush3.bf16.msra.mxu0 %v2107_v21 }
 0x134   :  { %1746 = vmatprep.subr.bf16.mxu0 %v1992_v0 }
 0x137   :  { %1748 = vmatpush3.bf16.msra.mxu0 %v2113_v24 }
 0x138   :  { %1749 = vmatprep.subr.bf16.mxu0 %v1992_v0 }
 0x13b   :  { %1751 = vmatpush3.bf16.msra.mxu0 %v2119_v27 }
 0x13c   :  { %1752 = vmatprep.subr.bf16.mxu0 %v1992_v0 }
 0x13f   :  { %1754 = vmatpush3.bf16.msra.mxu0 %v2125_v30 }
 0x140   :  { %1779 = vmatprep.subr.bf16.mxu0 %v1992_v0 }
 0x1f5   :  { %v394_v53 = vpop.f32.mrb[2].mxu0 }
 0x1f6   :  { %v2223_v54 = vadd.f32 %v394_v53, %v178_v52  ;;  %v1400_v55 = vpop.f32.mrb[3].mxu0 }
 0x1f8   :  { %v399_v56 = vmax.f32 %v2223_v54, 0.0 }
 0x1fa   :  { %1434 = vmatmul.mubr.f32.vlgmr.msra.gmra.mrb[8].mxu1 %v399_v56 }
 0x1fb   :  { %1757 = vmatpush3.bf16.msra.mxu1 %v2075_v5  ;;  %1503 = vmatprep.mubr.msk.f32.mxu1 %vm1993_vm0, %v1994_v1 }
 0x1fc   :  { %1758 = vmatprep.subr.bf16.mxu1 %v1992_v0 }
 0x1ff   :  { %1760 = vmatpush3.bf16.msra.mxu1 %v2078_v7 }
 0x200   :  { %1761 = vmatprep.subr.bf16.mxu1 %v1992_v0 }
 0x203   :  { %1763 = vmatpush3.bf16.msra.mxu1 %v2092_v14 }
 0x204   :  { %1764 = vmatprep.subr.bf16.mxu1 %v1992_v0 }
 0x207   :  { %1766 = vmatpush3.bf16.msra.mxu1 %v2100_v18 }
 0x208   :  { %1767 = vmatprep.subr.bf16.mxu1 %v1992_v0 }
 0x20b   :  { %1769 = vmatpush3.bf16.msra.mxu1 %v2107_v21 }
 0x20c   :  { %1770 = vmatprep.subr.bf16.mxu1 %v1992_v0 }
 0x20f   :  { %1772 = vmatpush3.bf16.msra.mxu1 %v2113_v24 }
 0x210   :  { %1773 = vmatprep.subr.bf16.mxu1 %v1992_v0 }
 0x213   :  { %1775 = vmatpush3.bf16.msra.mxu1 %v2119_v27 }
 0x214   :  { %1776 = vmatprep.subr.bf16.mxu1 %v1992_v0 }
 0x217   :  { %1778 = vmatpush3.bf16.msra.mxu1 %v2125_v30 }
 0x218   :  { %1803 = vmatprep.subr.bf16.mxu1 %v1992_v0 }
 0x2cd   :  { %v486_v58 = vpop.f32.mrb[8].mxu1 }
 0x2ce   :  { %v2247_v59 = vadd.f32 %v486_v58, %v183_v57  ;;  %v1435_v60 = vpop.f32.mrb[9].mxu1  ;;  %v208_v57 = vadd.f32 %v2218_v50, %v2188_v40 }
 0x2d0   :  { %v491_v61 = vmax.f32 %v2247_v59, 0.0 }
 0x2d2   :  { %1469 = vmatmul.mubr.f32.vlgmr.msra.gmra.mrb[4].mxu0 %v491_v61 }
 0x2d3   :  { %1781 = vmatpush3.bf16.msra.mxu0 %v2075_v5  ;;  %1538 = vmatprep.mubr.msk.f32.mxu0 %vm1993_vm0, %v1994_v1 }
 0x2d4   :  { %1782 = vmatprep.subr.bf16.mxu0 %v1992_v0 }
 0x2d7   :  { %1784 = vmatpush3.bf16.msra.mxu0 %v2078_v7 }
 0x2d8   :  { %1785 = vmatprep.subr.bf16.mxu0 %v1992_v0 }
 0x2db   :  { %1787 = vmatpush3.bf16.msra.mxu0 %v2092_v14 }
 0x2dc   :  { %1788 = vmatprep.subr.bf16.mxu0 %v1992_v0 }
 0x2df   :  { %1790 = vmatpush3.bf16.msra.mxu0 %v2100_v18 }
 0x2e0   :  { %1791 = vmatprep.subr.bf16.mxu0 %v1992_v0 }
 0x2e3   :  { %1793 = vmatpush3.bf16.msra.mxu0 %v2107_v21 }
 0x2e4   :  { %1794 = vmatprep.subr.bf16.mxu0 %v1992_v0 }
 0x2e7   :  { %1796 = vmatpush3.bf16.msra.mxu0 %v2113_v24 }
 0x2e8   :  { %1797 = vmatprep.subr.bf16.mxu0 %v1992_v0 }
 0x2eb   :  { %1799 = vmatpush3.bf16.msra.mxu0 %v2119_v27 }
 0x2ec   :  { %1800 = vmatprep.subr.bf16.mxu0 %v1992_v0 }
 0x2ef   :  { %1802 = vmatpush3.bf16.msra.mxu0 %v2125_v30 }
 0x2f0   :  { %1827 = vmatprep.subr.bf16.mxu0 %v1992_v0 }
 0x3a5   :  { %v578_v63 = vpop.f32.mrb[4].mxu0 }
 0x3a6   :  { %v2271_v2 = vadd.f32 %v578_v63, %v188_v62  ;;  %v1470_v3 = vpop.f32.mrb[5].mxu0 }
 0x3a8   :  { %v583_v4 = vmax.f32 %v2271_v2, 0.0 }
 0x3aa   :  { %1504 = vmatmul.mubr.f32.vlgmr.msra.gmra.mrb[10].mxu1 %v583_v4 }
 0x3ab   :  { %1805 = vmatpush3.bf16.msra.mxu1 %v2075_v5  ;;  %1573 = vmatprep.mubr.msk.f32.mxu1 %vm1993_vm0, %v1994_v1 }
 0x3ac   :  { %1806 = vmatprep.subr.bf16.mxu1 %v1992_v0 }
 0x3af   :  { %1808 = vmatpush3.bf16.msra.mxu1 %v2078_v7 }
 0x3b0   :  { %1809 = vmatprep.subr.bf16.mxu1 %v1992_v0 }
 0x3b3   :  { %1811 = vmatpush3.bf16.msra.mxu1 %v2092_v14 }
 0x3b4   :  { %1812 = vmatprep.subr.bf16.mxu1 %v1992_v0 }
 0x3b7   :  { %1814 = vmatpush3.bf16.msra.mxu1 %v2100_v18 }
 0x3b8   :  { %1815 = vmatprep.subr.bf16.mxu1 %v1992_v0 }
 0x3bb   :  { %1817 = vmatpush3.bf16.msra.mxu1 %v2107_v21 }
 0x3bc   :  { %1818 = vmatprep.subr.bf16.mxu1 %v1992_v0 }
 0x3bf   :  { %1820 = vmatpush3.bf16.msra.mxu1 %v2113_v24 }
 0x3c0   :  { %1821 = vmatprep.subr.bf16.mxu1 %v1992_v0 }
 0x3c3   :  { %1823 = vmatpush3.bf16.msra.mxu1 %v2119_v27 }
 0x3c4   :  { %1824 = vmatprep.subr.bf16.mxu1 %v1992_v0 }
 0x3c7   :  { %1826 = vmatpush3.bf16.msra.mxu1 %v2125_v30 }
 0x47d   :  { %v670_v8 = vpop.f32.mrb[10].mxu1 }
 0x47e   :  { %v2295_v9 = vadd.f32 %v670_v8, %v193_v6  ;;  %v1505_v10 = vpop.f32.mrb[11].mxu1 }
 0x480   :  { %v675_v11 = vmax.f32 %v2295_v9, 0.0 }
 0x482   :  { %1539 = vmatmul.mubr.f32.vlgmr.msra.gmra.mrb[6].mxu0 %v675_v11 }
 0x483   :  { %1829 = vmatpush3.bf16.msra.mxu0 %v2075_v5  ;;  %1608 = vmatprep.mubr.msk.f32.mxu0 %vm1993_vm0, %v1994_v1  ;;  %v963_v1 = vld [vmem:[#allocation8] sm:$0xff]  ;;  %v964_v5 = vld [vmem:[#allocation8 + $0x8] sm:$0xff] }
 0x484   :  { %1830 = vmatprep.subr.bf16.mxu0 %v1992_v0 }
 0x487   :  { %1832 = vmatpush3.bf16.msra.mxu0 %v2078_v7  ;;  %v1851_v7 = vpack.c.bf16 %v964_v5, %v963_v1 }
 0x488   :  { %1833 = vmatprep.subr.bf16.mxu0 %v1992_v0 }
 0x489   :  { %1852 = vmatprep.subr.bf16.mxu1 %v1851_v7 }
 0x48b   :  { %1835 = vmatpush3.bf16.msra.mxu0 %v2092_v14  ;;  %v965_v14 = vld [vmem:[#allocation8 + $0x10] sm:$0xff] }
 0x48c   :  { %1836 = vmatprep.subr.bf16.mxu0 %v1992_v0  ;;  %v1855_v19 = vpack.c.bf16 %v966_v15, %v965_v14 }
 0x48f   :  { %1838 = vmatpush3.bf16.msra.mxu0 %v2100_v18 }
 0x490   :  { %1839 = vmatprep.subr.bf16.mxu0 %v1992_v0 }
 0x493   :  { %1841 = vmatpush3.bf16.msra.mxu0 %v2107_v21  ;;  %v968_v21 = vld [vmem:[#allocation8 + $0x28] sm:$0xff] }
 0x494   :  { %1842 = vmatprep.subr.bf16.mxu0 %v1992_v0 }
 0x497   :  { %1844 = vmatpush3.bf16.msra.mxu0 %v2113_v24  ;;  %v1863_v24 = vpack.c.bf16 %v970_v23, %v969_v22 }
 0x498   :  { %1845 = vmatprep.subr.bf16.mxu0 %v1992_v0 }
 0x49b   :  { %1847 = vmatpush3.bf16.msra.mxu0 %v2119_v27  ;;  %v1867_v27 = vpack.c.bf16 %v972_v26, %v971_v25 }
 0x49c   :  { %1848 = vmatprep.subr.bf16.mxu0 %v1992_v0  ;;  %v1859_v0 = vpack.c.bf16 %v968_v21, %v967_v20 }
 0x49f   :  { %1850 = vmatpush3.bf16.msra.mxu0 %v2125_v30  ;;  %v1871_v30 = vpack.c.bf16 %v974_v29, %v973_v28 }
 0x555   :  { %v762_v13 = vpop.f32.mrb[6].mxu0 }
 0x556   :  { %v766_v16 = vadd.f32 %v762_v13, %v198_v12  ;;  %v1540_v17 = vpop.f32.mrb[7].mxu0 }
 0x558   :  { %v767_v18 = vmax.f32 %v766_v16, 0.0 }
 0x55a   :  { %1574 = vmatmul.mubr.f32.vlgmr.msra.gmra.mrb[12].mxu1 %v767_v18 }
 0x55b   :  { %1854 = vmatpush3.bf16.msra.mxu1 %v1851_v7  ;;  %1643 = vmatprep.mubr.f32.mxu1 %v308_v45 }
 0x55c   :  { %1856 = vmatprep.subr.bf16.mxu1 %v1855_v19 }
 0x55f   :  { %1858 = vmatpush3.bf16.msra.mxu1 %v1855_v19 }
 0x560   :  { %1860 = vmatprep.subr.bf16.mxu1 %v1859_v0 }
 0x563   :  { %1862 = vmatpush3.bf16.msra.mxu1 %v1859_v0 }
 0x564   :  { %1864 = vmatprep.subr.bf16.mxu1 %v1863_v24 }
 0x567   :  { %1866 = vmatpush3.bf16.msra.mxu1 %v1863_v24 }
 0x568   :  { %1868 = vmatprep.subr.bf16.mxu1 %v1867_v27 }
 0x56b   :  { %1870 = vmatpush3.bf16.msra.mxu1 %v1867_v27 }
 0x56c   :  { %1872 = vmatprep.subr.bf16.mxu1 %v1871_v30 }
 0x56f   :  { %1874 = vmatpush3.bf16.msra.mxu1 %v1871_v30 }
 0x570   :  { %1876 = vmatprep.subr.bf16.mxu1 %v1875_v33 }
 0x573   :  { %1878 = vmatpush3.bf16.msra.mxu1 %v1875_v33 }
 0x574   :  { %1880 = vmatprep.subr.bf16.mxu1 %v1879_v36 }
 0x577   :  { %1882 = vmatpush3.bf16.msra.mxu1 %v1879_v36 }
 0x57a   :  { %1644 = vmatmul.mubr.f32.vlgmr.msra.gmra.mrb[14].mxu1 %v399_v56 }
 0x57b   :  { %1646 = vmatprep.mubr.f32.mxu1 %v491_v61 }
 0x57e   :  { %1647 = vmatmul.mubr.f32.gmra.mrb[16].mxu1 %v583_v4 }
 0x57f   :  { %1649 = vmatprep.mubr.f32.mxu1 %v675_v11 }
 0x582   :  { %1650 = vmatmul.mubr.f32.gmra.mrb[18].mxu1 %v767_v18 }
 0x62d   :  { %v854_v38 = vpop.f32.mrb[12].mxu1 }
 0x62e   :  { %v858_v39 = vadd.f32 %v854_v38, %v203_v37  ;;  %v1575_v41 = vpop.f32.mrb[13].mxu1 }
 0x630   :  { %v859_v42 = vmax.f32 %v858_v39, 0.0 }
 0x632   :  { %1609 = vmatmul.mubr.f32.vlgmr.msra.gmra.mrb[8].mxu0 %v859_v42  ;;  %1652 = vmatprep.mubr.f32.mxu1 %v859_v42 }
 0x64d   :  { %v1645_v44 = vpop.f32.mrb[14].mxu1 }
 0x64e   :  { %v1058_v45 = vadd.f32 %v1645_v44, %v1144_v43  ;;  %v1052_v46 = vpop.f32.mrb[15].mxu1 }
 0x64f   :  { %v1053_v47 = vadd.f32 %v1144_v43, %v1052_v46 }
 0x650   :  { %1092 = vst [vmem:[#allocation10 + $0x8] sm:$0xff] %v1058_v45 }
 0x651   :  { %1091 = vst [vmem:[#allocation10] sm:$0xff] %v1053_v47  ;;  %v1648_v48 = vpop.f32.mrb[16].mxu1 }
 0x652   :  { %v1068_v49 = vadd.f32 %v1648_v48, %v1144_v43  ;;  %v1062_v52 = vpop.f32.mrb[17].mxu1 }
 0x653   :  { %v1063_v51 = vadd.f32 %v1144_v43, %v1062_v52 }
 0x654   :  { %1094 = vst [vmem:[#allocation10 + $0x18] sm:$0xff] %v1068_v49 }
 0x655   :  { %1093 = vst [vmem:[#allocation10 + $0x10] sm:$0xff] %v1063_v51  ;;  %v1651_v53 = vpop.f32.mrb[18].mxu1 }
 0x656   :  { %v1078_v54 = vadd.f32 %v1651_v53, %v1144_v43  ;;  %v1072_v55 = vpop.f32.mrb[19].mxu1 }
 0x657   :  { %v1073_v56 = vadd.f32 %v1144_v43, %v1072_v55 }
 0x658   :  { %1096 = vst [vmem:[#allocation10 + $0x28] sm:$0xff] %v1078_v54 }
 0x659   :  { %1095 = vst [vmem:[#allocation10 + $0x20] sm:$0xff] %v1073_v56 }
 0x705   :  { %v946_v58 = vpop.f32.mrb[8].mxu0 }
 0x706   :  { %v950_v59 = vadd.f32 %v946_v58, %v208_v57  ;;  %v1610_v60 = vpop.f32.mrb[9].mxu0 }
 0x708   :  { %v951_v61 = vmax.f32 %v950_v59, 0.0 }
 0x70a   :  { %1102 = vst [vmem:[#allocation11] sm:$0xff] %v951_v61  ;;  %1653 = vmatmul.mubr.f32.gmra.mrb[20].mxu1 %v951_v61 }
 0x70b   :  { %1947 = shalt.err (!%p1944_p6)
}
 0x70c   :  { %s1948_s11 = scalar_lea.hbm %s2371_s8, 128 }
 0x70d   :  { %p1949_p7 = scmp.ne.s32.totalorder %s2371_s8, %s1948_s11  ;;  %p1952_p8 = scmp.lt.u32.totalorder %s1948_s11, %s2371_s8 }
 0x70f   :  { %p1954_p9 = pnand %p1952_p8, %p1949_p7 }
 0x711   :  { %1957 = shalt.err (!%p1954_p9)
}
 0x712   :  { %1124 = dma.vmem_to_hbm [thread:$0]  %s1122_s5, 128, %s2371_s8, [#allocation12]  }
 0x713   :  { %s1996_s18 = smov [#allocation10]  }
 0x714   :  { %s1108_s19 = sshll.u32 %s1996_s18, 4  ;;  %s1109_s19 = int_to_ptr.vmem [resolvable:$true] %s1108_s19 }
 0x715   :  { %s1958_s20 = scalar_lea.vmem %s1109_s19, 1024  ;;  %p1963_p11 = scmp.lt.s32.totalorder %s1109_s19, %s1109_s19 }
 0x716   :  { %p1959_p10 = scmp.ne.s32.totalorder %s1109_s19, %s1958_s20  ;;  %p1964_p12 = scmp.lt.s32.totalorder %s1958_s20, %s1958_s20 }
 0x718   :  { %p1965_p13 = por %p1964_p12, %p1963_p11 }
 0x71a   :  { %p1966_p0 = pnand %p1965_p13, %p1959_p10 }
 0x7dd   :  { %v1654_v40 = vpop.f32.mrb[20].mxu1 }
 0x7de   :  { %v1088_v50 = vadd.f32 %v1654_v40, %v1144_v43  ;;  %v1082_v62 = vpop.f32.mrb[21].mxu1 }
 0x7df   :  { %v1083_v63 = vadd.f32 %v1144_v43, %v1082_v62 }
 0x7e0   :  { %1098 = vst [vmem:[#allocation10 + $0x38] sm:$0xff] %v1088_v50 }
 0x7e1   :  { %1097 = vst [vmem:[#allocation10 + $0x30] sm:$0xff] %v1083_v63 }
 0x7e2   :  { %1969 = shalt.err (!%p1966_p0)
}
 0x7e3   :  { %s1970_s8 = scalar_lea.hbm %s2370_s7, 1024 }
 0x7e4   :  { %p1971_p1 = scmp.ne.s32.totalorder %s2370_s7, %s1970_s8  ;;  %p1974_p2 = scmp.lt.u32.totalorder %s1970_s8, %s2370_s7 }
 0x7e6   :  { %p1976_p3 = pnand %p1974_p2, %p1971_p1 }
 0x7e8   :  { %1979 = shalt.err (!%p1976_p3)
}
 0x7e9   :  { %1114 = dma.vmem_to_hbm [thread:$0]  %s1109_s19, 1024, %s2370_s7, [#allocation7], %s1989_s15, %s1989_s15, %s1990_s16  }
 0x7ea   :  { %1984 = dma.done.wait [#allocation7], 1024  }
 0x7eb   :  { %1985 = vsyncadd [#allocation7], 4294966272 }
 0x7ec   :  { %1986 = dma.done.wait [#allocation12], 128  }
 0x7ed   :  { %1987 = vsyncadd [#allocation12], 4294967168 }
 0x7ee   :  { %1131 = vsyncpa [#allocation6], 1 }
 0x7ef   :  { %1132 = vsyncpa [#allocation9], 1 }
 0x7f0   :  { %1133 = vsyncpa [#allocation7], 1 }
 0x7f1   :  { %1134 = vsyncpa [#allocation12], 1 }

</bundles_post_ra>
